<compile_context>
chip_gen: v6e
topology: v6e:2x2x1
jax: 0.10.0
libtpu: 0.0.40
codegen_flags: <defaults>
</compile_context>

<pallas_src>
import math

import jax
import jax.numpy as jnp
from jax.experimental import pallas as pl
from jax.experimental.pallas import tpu as pltpu

EPS = 1e-5


def _gating_context_kernel(xk_ref, w_ref, xg_ref, gamma_ref, beta_ref,
                           o_ref, acc_ref):
    k = pl.program_id(1)

    @pl.when(k == 0)
    def _():
        acc_ref[...] = jnp.zeros_like(acc_ref)

    # MXU: acc += x[:, k*tk:(k+1)*tk] @ W[k*tk:(k+1)*tk, j*tn:(j+1)*tn]
    # (operands fed in native dtype, f32 accumulation).
    acc_ref[...] += jnp.dot(xk_ref[...], w_ref[...],
                            preferred_element_type=jnp.float32)

    @pl.when(k == pl.num_programs(1) - 1)
    def _():
        gates = acc_ref[...]                                   # (B, tn) f32
        inv_b = jnp.float32(1.0 / gates.shape[0])

        # BatchNorm1d (training mode, biased variance), two-pass statistics.
        mean = jnp.sum(gates, axis=0, keepdims=True) * inv_b   # (1, tn)
        centered = gates - mean
        var = jnp.sum(centered * centered, axis=0, keepdims=True) * inv_b
        inv_std = jax.lax.rsqrt(var + EPS)
        scale = gamma_ref[...].astype(jnp.float32) * inv_std   # (1, tn)
        shift = beta_ref[...].astype(jnp.float32) - mean * scale

        z = gates * scale + shift
        # sigmoid(z) with a single EUP transcendental per element.
        g = 0.5 * (jnp.tanh(0.5 * z) + 1.0)                    # (B, tn) f32

        x_slab = xg_ref[...]                                   # (B, tn) native dtype
        if o_ref.dtype == jnp.float32:
            o_ref[...] = x_slab.astype(jnp.float32) * g
        else:
            # bf16 gating multiply + store (v6e/v7x bf16 VALU); BN / sigmoid
            # math above stays in f32.
            o_ref[...] = x_slab * g.astype(o_ref.dtype)


def _vmem_capacity_bytes():
    try:
        return int(pltpu.get_tpu_info().vmem_capacity_bytes)
    except Exception:
        return 64 << 20  # conservative fallback (v7x per-TensorCore VMEM)


def _pick_feature_tile(d):
    """Largest lane-dense (multiple-of-128) tile dividing d, capped at 512,
    shrunk so d // tn >= 2 where possible (lets v7x shard the parallel
    feature axis across its 2 TensorCores)."""
    if d % 128 != 0:
        return d  # fall back to the full feature dim (block == array extent)
    tn = 128
    for cand in (512, 256, 128):
        if d % cand == 0:
            tn = cand
            break
    while tn > 128 and d // tn < 2:
        tn //= 2
    return tn


def _footprint_bytes(b, tn, tk, bpe_x, bpe_w):
    """Per-step VMEM working set: double-buffered input/output tiles, the f32
    accumulator scratch and the f32 epilogue intermediates."""
    xk = 2 * b * tk * bpe_x        # streamed x chunks (double buffered)
    w = 2 * tk * tn * bpe_w        # streamed W tiles
    xg = 2 * b * tn * bpe_x        # x slab used for the gating multiply
    gb = 2 * 2 * tn * 4            # gamma / beta tiles
    out = 2 * b * tn * bpe_x       # output tile
    acc = b * tn * 4               # f32 accumulator scratch
    tmp = 4 * b * tn * 4           # centered / z / g f32 intermediates
    return xk + w + xg + gb + out + acc + tmp


def _pick_k_tile(b, d, tn, bpe_x, bpe_w, budget):
    cands = [d] + [c for c in (2048, 1024, 512, 256, 128)
                   if c < d and d % c == 0]
    for tk in cands:
        if _footprint_bytes(b, tn, tk, bpe_x, bpe_w) <= budget:
            return tk
    return cands[-1]


def gating_context(x, gating_weights, bn_gamma, bn_beta):
    """x: (B, dim). Returns x * sigmoid(BatchNorm1d(x @ W)) (training-mode BN).

    NOTE: batch calls so B >= 128 (v5e) / 256 (v6e, v7x) and a multiple of
    8 (f32) / 16 (bf16) for real MXU utilisation; at tiny B this kernel is
    pipeline-fill / fixed-overhead bound.
    """
    B, D = x.shape
    bpe_x = jnp.dtype(x.dtype).itemsize
    bpe_w = jnp.dtype(gating_weights.dtype).itemsize

    vmem_cap = _vmem_capacity_bytes()
    tn = _pick_feature_tile(D)
    tk = _pick_k_tile(B, D, tn, bpe_x, bpe_w, budget=int(0.6 * vmem_cap))
    nj = D // tn
    nk = D // tk

    gamma2d = bn_gamma.reshape(1, D).astype(jnp.float32)
    beta2d = bn_beta.reshape(1, D).astype(jnp.float32)

    footprint = _footprint_bytes(B, tn, tk, bpe_x, bpe_w)
    vmem_limit = min(footprint + (2 << 20), vmem_cap * 7 // 8)
    vmem_limit = int(max(vmem_limit, 4 << 20))

    cost = pl.CostEstimate(
        flops=2 * B * D * D + 8 * B * D,
        transcendentals=B * D,
        bytes_accessed=(2 * B * D * bpe_x      # x read for matmul + gating slab
                        + D * D * bpe_w        # W
                        + 2 * D * 4            # gamma, beta
                        + B * D * bpe_x),      # output
    )

    return pl.pallas_call(
        _gating_context_kernel,
        out_shape=jax.ShapeDtypeStruct((B, D), x.dtype),
        grid_spec=pltpu.PrefetchScalarGridSpec(
            num_scalar_prefetch=0,
            grid=(nj, nk),                                     # (feature, reduction)
            in_specs=[
                pl.BlockSpec((B, tk), lambda j, k: (0, k)),    # x, K-streamed
                pl.BlockSpec((tk, tn), lambda j, k: (k, j)),   # W tile
                pl.BlockSpec((B, tn), lambda j, k: (0, j)),    # x slab for gating
                pl.BlockSpec((1, tn), lambda j, k: (0, j)),    # gamma
                pl.BlockSpec((1, tn), lambda j, k: (0, j)),    # beta
            ],
            out_specs=pl.BlockSpec((B, tn), lambda j, k: (0, j)),
            scratch_shapes=[pltpu.VMEM((B, tn), jnp.float32)],
        ),
        compiler_params=pltpu.CompilerParams(
            dimension_semantics=("parallel", "arbitrary"),
            vmem_limit_bytes=vmem_limit,
        ),
        cost_estimate=cost,
    )(x, gating_weights, x, gamma2d, beta2d)


def _reference(x, w, gamma, beta):
    xf = x.astype(jnp.float32)
    gates = xf @ w.astype(jnp.float32)
    mean = jnp.mean(gates, axis=0, keepdims=True)
    var = jnp.mean((gates - mean) ** 2, axis=0, keepdims=True)
    gates = (gates - mean) / jnp.sqrt(var + EPS) * gamma + beta
    return (xf * jax.nn.sigmoid(gates)).astype(x.dtype)


if __name__ == "__main__":
    # Small shapes consistent with GatingContext(dim=256); DIM=256 exercises
    # the multi-feature-tile (nj > 1) path that was previously broken.
    B, DIM = 16, 256

    key = jax.random.PRNGKey(0)
    kx, kw, kg, kb = jax.random.split(key, 4)

    x = jax.random.normal(kx, (B, DIM), dtype=jnp.float32)
    # gating_weights ~ randn(dim, dim) / sqrt(dim)
    gating_weights = (
        jax.random.normal(kw, (DIM, DIM), dtype=jnp.float32) / math.sqrt(DIM)
    )
    # BatchNorm1d affine params (deterministic, non-trivial).
    bn_gamma = 1.0 + 0.1 * jax.random.normal(kg, (DIM,), dtype=jnp.float32)
    bn_beta = 0.1 * jax.random.normal(kb, (DIM,), dtype=jnp.float32)

    out = gating_context(x, gating_weights, bn_gamma, bn_beta)
    out = jax.block_until_ready(out)

    ref = _reference(x, gating_weights, bn_gamma, bn_beta)
    assert jnp.allclose(out, ref, atol=1e-4, rtol=1e-4), "mismatch vs reference"

    print("KERNEL_OK")
</pallas_src>

<mosaic_0001>
module attributes {stable_mosaic.version = 11 : i64} {
  func.func @_gating_context_kernel(%arg0: i32, %arg1: i32, %arg2: memref<16x256xf32, #tpu.memory_space<vmem>>, %arg3: memref<256x128xf32, #tpu.memory_space<vmem>>, %arg4: memref<16x128xf32, #tpu.memory_space<vmem>>, %arg5: memref<1x128xf32, #tpu.memory_space<vmem>>, %arg6: memref<1x128xf32, #tpu.memory_space<vmem>>, %arg7: memref<16x128xf32, #tpu.memory_space<vmem>>, %arg8: memref<16x128xf32, #tpu.memory_space<vmem>>) attributes {dimension_semantics = [#tpu.dimension_semantics<parallel>, #tpu.dimension_semantics<arbitrary>], iteration_bounds = array<i64: 2, 1>, scalar_prefetch = 0 : i64, scratch_operands = 1 : i64, tpu.core_type = #tpu.core_type<tc>, window_params = [{transform_indices = @transform_0, window_bounds = array<i64: 16, 256>}, {transform_indices = @transform_1, window_bounds = array<i64: 256, 128>}, {transform_indices = @transform_2, window_bounds = array<i64: 16, 128>}, {transform_indices = @transform_3, window_bounds = array<i64: 1, 128>}, {transform_indices = @transform_4, window_bounds = array<i64: 1, 128>}, {transform_indices = @transform_5, window_bounds = array<i64: 16, 128>}]} {
    %c0_i32 = arith.constant 0 : i32
    %0 = arith.cmpi eq, %arg1, %c0_i32 : i32
    %1 = arith.extui %0 : i1 to i32
    %c0_i32_0 = arith.constant 0 : i32
    %2 = arith.cmpi ne, %1, %c0_i32_0 : i32
    scf.if %2 {
      %cst_10 = arith.constant 0.000000e+00 : f32
      %12 = vector.broadcast %cst_10 : f32 to vector<16x128xf32>
      %c0_11 = arith.constant 0 : index
      %c0_12 = arith.constant 0 : index
      %13 = vector.load %arg8[%c0_11, %c0_12] : memref<16x128xf32, #tpu.memory_space<vmem>>, vector<16x128xf32>
      tpu.vector_store %arg8[%c0_11, %c0_12], %12 {strides = array<i32>} : memref<16x128xf32, #tpu.memory_space<vmem>>, vector<16x128xf32>,
    } else {
    }
    %c0 = arith.constant 0 : index
    %c0_1 = arith.constant 0 : index
    %3 = vector.load %arg8[%c0, %c0_1] : memref<16x128xf32, #tpu.memory_space<vmem>>, vector<16x128xf32>
    %c0_2 = arith.constant 0 : index
    %c0_3 = arith.constant 0 : index
    %4 = vector.load %arg2[%c0_2, %c0_3] : memref<16x256xf32, #tpu.memory_space<vmem>>, vector<16x256xf32>
    %c0_4 = arith.constant 0 : index
    %c0_5 = arith.constant 0 : index
    %5 = vector.load %arg3[%c0_4, %c0_5] : memref<256x128xf32, #tpu.memory_space<vmem>>, vector<256x128xf32>
    %cst = arith.constant dense<0.000000e+00> : vector<16x128xf32>
    %6 = tpu.matmul %4, %5, %cst {dimension_numbers = #tpu.dot_dimension_numbers<[1], [0], [0], [1], [0, 0, 1, 1], [], []>} : vector<16x256xf32>, vector<256x128xf32>, vector<16x128xf32> -> vector<16x128xf32>
    %7 = arith.addf %3, %6 : vector<16x128xf32>
    %c0_6 = arith.constant 0 : index
    %c0_7 = arith.constant 0 : index
    %8 = vector.load %arg8[%c0_6, %c0_7] : memref<16x128xf32, #tpu.memory_space<vmem>>, vector<16x128xf32>
    tpu.vector_store %arg8[%c0_6, %c0_7], %7 {strides = array<i32>} : memref<16x128xf32, #tpu.memory_space<vmem>>, vector<16x128xf32>,
    %c0_i32_8 = arith.constant 0 : i32
    %9 = arith.cmpi eq, %arg1, %c0_i32_8 : i32
    %10 = arith.extui %9 : i1 to i32
    %c0_i32_9 = arith.constant 0 : i32
    %11 = arith.cmpi ne, %10, %c0_i32_9 : i32
    scf.if %11 {
      %c0_10 = arith.constant 0 : index
      %c0_11 = arith.constant 0 : index
      %12 = vector.load %arg8[%c0_10, %c0_11] : memref<16x128xf32, #tpu.memory_space<vmem>>, vector<16x128xf32>
      %cst_12 = arith.constant dense<0.000000e+00> : vector<128xf32>
      %13 = vector.multi_reduction <add>, %12, %cst_12 [0] : vector<16x128xf32> to vector<128xf32>
      %14 = vector.shape_cast %13 : vector<128xf32> to vector<1x128xf32>
      %cst_13 = arith.constant 6.250000e-02 : f32
      %15 = vector.broadcast %cst_13 : f32 to vector<1x128xf32>
      %16 = arith.mulf %14, %15 : vector<1x128xf32>
      %17 = vector.broadcast %16 : vector<1x128xf32> to vector<16x128xf32>
      %18 = arith.subf %12, %17 : vector<16x128xf32>
      %19 = arith.mulf %18, %18 : vector<16x128xf32>
      %cst_14 = arith.constant dense<0.000000e+00> : vector<128xf32>
      %20 = vector.multi_reduction <add>, %19, %cst_14 [0] : vector<16x128xf32> to vector<128xf32>
      %21 = vector.shape_cast %20 : vector<128xf32> to vector<1x128xf32>
      %cst_15 = arith.constant 6.250000e-02 : f32
      %22 = vector.broadcast %cst_15 : f32 to vector<1x128xf32>
      %23 = arith.mulf %21, %22 : vector<1x128xf32>
      %cst_16 = arith.constant 9.99999974E-6 : f32
      %24 = vector.broadcast %cst_16 : f32 to vector<1x128xf32>
      %25 = arith.addf %23, %24 : vector<1x128xf32>
      %26 = math.rsqrt %25 : vector<1x128xf32>
      %c0_17 = arith.constant 0 : index
      %c0_18 = arith.constant 0 : index
      %27 = vector.load %arg5[%c0_17, %c0_18] : memref<1x128xf32, #tpu.memory_space<vmem>>, vector<1x128xf32>
      %28 = arith.mulf %27, %26 : vector<1x128xf32>
      %c0_19 = arith.constant 0 : index
      %c0_20 = arith.constant 0 : index
      %29 = vector.load %arg6[%c0_19, %c0_20] : memref<1x128xf32, #tpu.memory_space<vmem>>, vector<1x128xf32>
      %30 = arith.mulf %16, %28 : vector<1x128xf32>
      %31 = arith.subf %29, %30 : vector<1x128xf32>
      %32 = vector.broadcast %28 : vector<1x128xf32> to vector<16x128xf32>
      %33 = arith.mulf %12, %32 : vector<16x128xf32>
      %34 = vector.broadcast %31 : vector<1x128xf32> to vector<16x128xf32>
      %35 = arith.addf %33, %34 : vector<16x128xf32>
      %cst_21 = arith.constant 5.000000e-01 : f32
      %36 = vector.broadcast %cst_21 : f32 to vector<16x128xf32>
      %37 = arith.mulf %36, %35 : vector<16x128xf32>
      %38 = math.tanh %37 : vector<16x128xf32>
      %cst_22 = arith.constant 1.000000e+00 : f32
      %39 = vector.broadcast %cst_22 : f32 to vector<16x128xf32>
      %40 = arith.addf %38, %39 : vector<16x128xf32>
      %cst_23 = arith.constant 5.000000e-01 : f32
      %41 = vector.broadcast %cst_23 : f32 to vector<16x128xf32>
      %42 = arith.mulf %41, %40 : vector<16x128xf32>
      %c0_24 = arith.constant 0 : index
      %c0_25 = arith.constant 0 : index
      %43 = vector.load %arg4[%c0_24, %c0_25] : memref<16x128xf32, #tpu.memory_space<vmem>>, vector<16x128xf32>
      %44 = arith.mulf %43, %42 : vector<16x128xf32>
      %c0_26 = arith.constant 0 : index
      %c0_27 = arith.constant 0 : index
      %45 = vector.load %arg7[%c0_26, %c0_27] : memref<16x128xf32, #tpu.memory_space<vmem>>, vector<16x128xf32>
      tpu.vector_store %arg7[%c0_26, %c0_27], %44 {strides = array<i32>} : memref<16x128xf32, #tpu.memory_space<vmem>>, vector<16x128xf32>,
    } else {
    }
    return
  }
  func.func @transform_0(%arg0: i32, %arg1: i32) -> (i32, i32) {
    %c0_i32 = arith.constant 0 : i32
    %c0_i32_0 = arith.constant 0 : i32
    return %c0_i32, %arg1 : i32, i32
  }
  func.func @transform_1(%arg0: i32, %arg1: i32) -> (i32, i32) {
    %c0_i32 = arith.constant 0 : i32
    return %arg1, %arg0 : i32, i32
  }
  func.func @transform_2(%arg0: i32, %arg1: i32) -> (i32, i32) {
    %c0_i32 = arith.constant 0 : i32
    %c0_i32_0 = arith.constant 0 : i32
    return %c0_i32, %arg0 : i32, i32
  }
  func.func @transform_3(%arg0: i32, %arg1: i32) -> (i32, i32) {
    %c0_i32 = arith.constant 0 : i32
    %c0_i32_0 = arith.constant 0 : i32
    return %c0_i32, %arg0 : i32, i32
  }
  func.func @transform_4(%arg0: i32, %arg1: i32) -> (i32, i32) {
    %c0_i32 = arith.constant 0 : i32
    %c0_i32_0 = arith.constant 0 : i32
    return %c0_i32, %arg0 : i32, i32
  }
  func.func @transform_5(%arg0: i32, %arg1: i32) -> (i32, i32) {
    %c0_i32 = arith.constant 0 : i32
    %c0_i32_0 = arith.constant 0 : i32
    return %c0_i32, %arg0 : i32, i32
  }
}

</mosaic_0001>

<bundles_post_ra>
// kernel: tpu_custom_call.1
= control target key start
LH: loop header
LB: loop body
LE: loop exit
PB: predicated region body
PF: predicated region fallthrough
CT: control target
= control target key end

     0   :  { %10 = vsyncpa [#allocation4], 0  ;;  %s1336_s0 = inlined_call_operand.hbm [shape: f32[16,256], index: 0, kind: input, shape index: {}]   ;;  %s1337_s1 = inlined_call_operand.hbm [shape: f32[256,256], index: 1, kind: input, shape index: {}]   ;;  %s1338_s2 = inlined_call_operand.hbm [shape: f32[16,256], index: 2, kind: input, shape index: {}]   ;;  %s1339_s3 = inlined_call_operand.vmem [shape: f32[1,256], index: 3, kind: input, shape index: {}]   ;;  %s1340_s4 = inlined_call_operand.vmem [shape: f32[1,256], index: 4, kind: input, shape index: {}]   ;;  %s1341_s5 = inlined_call_operand.hbm [shape: f32[16,256], index: 5, kind: output, shape index: {}]  }
   0x1   :  { %11 = vsyncpa [#allocation7], 0 }
   0x2   :  { %13 = vsyncpa [#allocation7 + $0x1], 0 }
   0x3   :  { %14 = vsyncpa [#allocation5], 0 }
   0x4   :  { %16 = vsyncpa [#allocation5 + $0x1], 0  ;;  %s1069_s18 = smov 0   ;;  %s1071_s19 = smov 0  }
   0x5   :  { %s1073_s20 = smov 0   ;;  %s1075_s21 = smov 0  }
   0x6   :  { %s1077_s22 = smov 0   ;;  %s1079_s23 = smov 0  }
   0x7 LB: > { %s34_s24 = sadd.s32 1, %s1022_s22  ;;  %s69_s25 = sadd.s32 1, %s1014_s20  ;;  %s1026_s23 = sphi %s1079_s23, %s22_s23   ;;  %s1022_s22 = sphi %s1077_s22, %s1363_s22   ;;  %s1018_s21 = sphi %s1075_s21, %s1362_s21   ;;  %s1014_s20 = sphi %s1073_s20, %s1361_s20   ;;  %s1010_s19 = sphi %s1071_s19, %s1360_s19   ;;  %s1006_s18 = sphi %s1069_s18, %s1359_s18  }
   0x8   : > { %p36_p0 = scmp.ge.s32.totalorder %s34_s24, 2  ;;  %p76_p1 = scmp.ne.s32.totalorder %s1014_s20, %s1010_s19 }
   0x9   : > { %p77_p2 = scmp.eq.s32.totalorder %s1026_s23, 0  ;;  %p795_p5 = scmp.lt.s32.totalorder %s1026_s23, 2 }
   0xa   : > { %s1365_s24 = smov (%p36_p0, %s34_s24), 0  ;;  %s226_s28 = sand.u32 1, %s1026_s23  }
   0xb   : > { %p1109_p3 = por %p77_p2, %p76_p1  ;;  %s65_s27 = ssub.s32 %s1022_s22, %s1365_s24 }
   0xc   : > { %p67_p6 = scmp.eq.s32.totalorder %s65_s27, 0  ;;  %s228_s29 = sand.u32 1, %s1014_s20  }
   0xd   : > { %s686_s6 = sshll.u32 %s228_s29, 8  ;;  %s687_s7 = sshll.u32 %s1022_s22, 7 }
   0xe   : > { %s1120_s30 = scalar_select %p67_p6, %s1014_s20, %s69_s25  }
   0xf   : > { %s238_s10 = scalar_lea.hbm %s1337_s1, %s687_s7  ;;  %s230_s11 = scalar_lea.vmem [#allocation6], %s686_s6 }
  0x10   : > { %s239_s12 = sshll.u32 %s230_s11, 4  ;;  %p1132_p7 = pnand %p795_p5, %p1109_p3  ;;  %s240_s12 = int_to_ptr.vmem [resolvable:$true] %s239_s12 }
  0x11   : > { %s1136_s14 = scalar_lea.sflag [#allocation7], %s226_s28  ;;  %s873_s15 = scalar_lea.vmem %s240_s12, 4096 }
  0x12   : > { %p862_p8 = pneg %p1132_p7  ;;  %p874_p9 = scmp.ne.s32.totalorder %s240_s12, %s873_s15 }
  0x13   : > { %s1028_s16 = smov [#allocation6]  }
  0x14   : > { %p876_p10 = pnand %p874_p9, %p862_p8  ;;  %s878_s17 = sshll.u32 %s1028_s16, 4  ;;  %s879_s17 = int_to_ptr.vmem [resolvable:$false] %s878_s17 }
  0x15   : > { %s880_s25 = scalar_lea.vmem %s879_s17, 8192  ;;  %p881_p12 = scmp.lt.s32.totalorder %s240_s12, %s879_s17 }
  0x16   : > { %p877_p11 = pneg %p876_p10  ;;  %p882_p13 = scmp.lt.s32.totalorder %s880_s25, %s873_s15 }
  0x18   : > { %p883_p0 = por %p882_p13, %p881_p12 }
  0x1a   : > { %p884_p2 = pnand %p883_p0, %p877_p11 }
  0x1c   : > { %887 = shalt.err (!%p884_p2)
}
  0x1d   : > { %s1342_s26 = smov 256   ;;  %s1030_s27 = smov 128  }
  0x1e   : > { %s1031_s28 = smov 8   ;;  %s688_s6 = sshll.u32 %s228_s29, 4 }
  0x1f   : > { %786 = dma.hbm_to_vmem [thread:$0]  (!%p1132_p7), %s238_s10, 4096, %s240_s12, %s1136_s14, %s1342_s26, %s1030_s27, %s1031_s28  }
  0x20   : > { %s1156_s11 = scalar_lea.hbm %s1338_s2, %s687_s7  ;;  %s253_s15 = scalar_lea.vmem [#allocation8], %s688_s6 }
  0x21   : > { %s259_s16 = sshll.u32 %s253_s15, 4  ;;  %s1161_s17 = sadd.s32 4294967295, %s1026_s23   ;;  %s1158_s16 = int_to_ptr.vmem [resolvable:$true] %s259_s16 }
  0x22   : > { %s682_s10 = sadd.s32 4294967294, %s1026_s23   ;;  %p82_p3 = scmp.ne.s32.totalorder %s1010_s19, %s1006_s18 }
  0x23   : > { %p1344_p5 = scmp.eq.s32.totalorder %s1161_s17, 0  ;;  %p184_p6 = scmp.eq.s32.totalorder %s1161_s17, 1 }
  0x24   : > { %p190_p9 = scmp.eq.s32.totalorder %s682_s10, 1  ;;  %p683_p10 = scmp.ge.s32.totalorder %s1026_s23, 1 }
  0x25   : > { %p1171_p11 = por %p1344_p5, %p82_p3  ;;  %p1178_p12 = por %p184_p6, %p76_p1 }
  0x26   : > { %p1182_p13 = por %p190_p9, %p82_p3  ;;  %p197_p0 = scmp.lt.s32.totalorder %s1026_s23, 3 }
  0x27   : > { %s1349_s7 = scalar_select %p1178_p12, 1, 0 }
  0x28   : > { %s1350_s12 = scalar_select %p1182_p13, 1, 0 }
  0x29   : > { %p1187_p2 = pnand %p683_p10, %p197_p0  ;;  %s1032_s6 = smov [#allocation3]  }
  0x2a   : > { %s212_s8 = sshll.u32 %s1032_s6, 4  ;;  %s901_s9 = scalar_lea.vmem %s1158_s16, 256  ;;  %s1193_s8 = int_to_ptr.vmem [resolvable:$true] %s212_s8 }
  0x2b   : > { %p779_p4 = pneg %p1187_p2  ;;  %p902_p1 = scmp.ne.s32.totalorder %s1158_s16, %s901_s9 }
  0x2c   : > { %s1033_s15 = smov [#allocation8]  }
  0x2d   : > { %p904_p3 = pnand %p902_p1, %p862_p8  ;;  %s906_s10 = sshll.u32 %s1033_s15, 4  ;;  %s907_s10 = int_to_ptr.vmem [resolvable:$false] %s906_s10 }
  0x2e   : > { %s908_s26 = scalar_lea.vmem %s907_s10, 512  ;;  %p909_p9 = scmp.lt.s32.totalorder %s1158_s16, %s907_s10 }
  0x2f   : > { %p905_p6 = pneg %p904_p3  ;;  %p910_p10 = scmp.lt.s32.totalorder %s908_s26, %s901_s9 }
  0x31   : > { %p911_p0 = por %p910_p10, %p909_p9 }
  0x33   : > { %p912_p5 = pnand %p911_p0, %p905_p6 }
  0x35   : > { %915 = shalt.err (!%p912_p5)
}
  0x36   : > { %s1352_s6 = smov 256   ;;  %p1353_p8 = scmp.eq.s32.totalorder %s1161_s17, 0 }
  0x37   : > { %789 = dma.hbm_to_vmem [thread:$0]  (!%p1132_p7), %s1156_s11, 256, %s1158_s16, %s1136_s14, %s1352_s6, %s1030_s27, %s1031_s28  }
  0x38   : > { %p780_p1 = pnand %p779_p4, %p1353_p8  ;;  %s927_s26 = scalar_lea.vmem %s1193_s8, 512 }
  0x39   : > { %p928_p5 = scmp.ne.s32.totalorder %s1193_s8, %s927_s26  ;;  %p935_p10 = scmp.lt.s32.totalorder %s1193_s8, %s1193_s8 }
  0x3a   : > { %p918_p3 = pneg %p780_p1  ;;  %p936_p0 = scmp.lt.s32.totalorder %s927_s26, %s927_s26 }
  0x3c   : > { %p930_p6 = pnand %p928_p5, %p918_p3  ;;  %p937_p13 = por %p936_p0, %p935_p10 }
  0x3e   : > { %p931_p9 = pneg %p930_p6 }
  0x40   : > { %p938_p12 = pnand %p937_p13, %p931_p9 }
  0x42   : > { %941 = shalt.err (!%p938_p12)
}
  0x43   : > { %s1034_s13 = smov 16   ;;  %283 = sbr.rel (%p1187_p2) target bundleno = 408 (0x198), region = 40 }
  0x44   : > { %782 = dma.hbm_to_vmem [thread:$0]  (!%p780_p1), %s1336_s0, 512, %s1193_s8, [#allocation4], %s1352_s6, %s1352_s6, %s1034_s13  }
  0x45   : > { %p1354_p4 = scmp.eq.s32.totalorder (!%p1187_p2), %s1161_s17, 0 }
  0x48   : > { %993 = dma.done.wait (%p1354_p4), [#allocation4], 512   ;;  %p1355_p7 = pmov %p1354_p4 }
  0x49   : > { %s289_s28 = sand.u32 1, %s1161_s17   ;;  %s1232_s11 = sand.u32 1, %s1010_s19  }
  0x4a   : > { %995 = vsyncadd (%p1355_p7), [#allocation4], 4294966784  ;;  %s692_s16 = sshll.u32 %s1232_s11, 8  ;;  %s290_s9 = scalar_lea.sflag [#allocation7], %s289_s28 }
  0x4b   : > { %s1235_s15 = scalar_lea.vmem [#allocation6], %s692_s16 }
  0x4c   : > { %997 = dma.done.wait (%p1171_p11), %s290_s9, 4352  }
  0x4d   : > { %999 = vsyncadd (%p1171_p11), %s290_s9, 4294962944  ;;  %v391_v0 = vld [vmem:[%s1235_s15 + $0xf8] sm:$0xff]  ;;  %v390_v2 = vld [vmem:[%s1235_s15 + $0xf0] sm:$0xff]  ;;  %p342_p11 = scmp.lt.s32.totalorder %s1018_s21, 1  ;;  %v504_v63 = vlaneseq  ;;  %s693_s13 = sshll.u32 %s1232_s11, 4 }
  0x4e   : > { %v375_v1 = vld [vmem:[%s1235_s15 + $0x78] sm:$0xff]  ;;  %699 = vmatprep.subr.mxu0 %v391_v0  ;;  %737 = vmatprep.subr.mxu1 %v391_v0  ;;  %v374_v3 = vld [vmem:[%s1235_s15 + $0x70] sm:$0xff]  ;;  %v389_v4 = vld [vmem:[%s1235_s15 + $0xe8] sm:$0xff]  ;;  %s696_s14 = sshll.u32 %s1018_s21, 7  ;;  %s302_s27 = scalar_lea.vmem [#allocation8], %s693_s13 }
  0x4f   : > { %700 = vmatpush3.msra.mxu0 %v375_v1  ;;  %753 = vmatpush3.msra.mxu1 %v375_v1  ;;  %v373_v5 = vld [vmem:[%s1235_s15 + $0x68] sm:$0xff]  ;;  %v388_v6 = vld [vmem:[%s1235_s15 + $0xe0] sm:$0xff]  ;;  %v387_v8 = vld [vmem:[%s1235_s15 + $0xd8] sm:$0xff]  ;;  %s343_s17 = scalar_select %p342_p11, %s1018_s21, 1  ;;  %v505_v0 = vshrl.u32 %v504_v63, 7 }
  0x50   : > { %701 = vmatprep.subr.mxu0 %v390_v2  ;;  %738 = vmatprep.subr.mxu1 %v390_v2  ;;  %v372_v7 = vld [vmem:[%s1235_s15 + $0x60] sm:$0xff]  ;;  %v371_v9 = vld [vmem:[%s1235_s15 + $0x58] sm:$0xff]  ;;  %v386_v10 = vld [vmem:[%s1235_s15 + $0xd0] sm:$0xff]  ;;  %s339_s28 = scalar_lea.vmem [#allocation9], %s693_s13  ;;  %s534_s21 = scalar_lea.sflag [#allocation5], %s1232_s11 }
  0x51   : > { %702 = vmatpush3.msra.mxu0 %v374_v3  ;;  %754 = vmatpush3.msra.mxu1 %v374_v3  ;;  %v370_v11 = vld [vmem:[%s1235_s15 + $0x50] sm:$0xff]  ;;  %v385_v12 = vld [vmem:[%s1235_s15 + $0xc8] sm:$0xff]  ;;  %v384_v14 = vld [vmem:[%s1235_s15 + $0xc0] sm:$0xff]  ;;  %s344_s8 = scalar_lea.vmem %s1339_s3, %s343_s17  ;;  %s347_s26 = scalar_lea.vmem %s1340_s4, %s343_s17  ;;  %v506_v2 = vsub.s32 0, %v505_v0 }
  0x52   : > { %703 = vmatprep.subr.mxu0 %v389_v4  ;;  %739 = vmatprep.subr.mxu1 %v389_v4  ;;  %v369_v13 = vld [vmem:[%s1235_s15 + $0x48] sm:$0xff]  ;;  %v368_v15 = vld [vmem:[%s1235_s15 + $0x40] sm:$0xff]  ;;  %v383_v16 = vld [vmem:[%s1235_s15 + $0xb8] sm:$0xff]  ;;  %s546_s16 = sshll.u32 %s339_s28, 4  ;;  %s1286_s17 = scalar_lea.hbm %s1341_s5, %s696_s14  ;;  %s1288_s16 = int_to_ptr.vmem [resolvable:$true] %s546_s16 }
  0x53   : > { %704 = vmatpush3.msra.mxu0 %v373_v5  ;;  %755 = vmatpush3.msra.mxu1 %v373_v5  ;;  %v367_v17 = vld [vmem:[%s1235_s15 + $0x38] sm:$0xff]  ;;  %v382_v18 = vld [vmem:[%s1235_s15 + $0xb0] sm:$0xff]  ;;  %v381_v20 = vld [vmem:[%s1235_s15 + $0xa8] sm:$0xff]  ;;  %s942_s29 = scalar_lea.vmem %s1288_s16, 256  ;;  %p1356_p13 = scmp.ne.s32.totalorder %s1349_s7, 0 }
  0x54   : > { %705 = vmatprep.subr.mxu0 %v388_v6  ;;  %740 = vmatprep.subr.mxu1 %v388_v6  ;;  %v366_v19 = vld [vmem:[%s1235_s15 + $0x30] sm:$0xff]  ;;  %v365_v21 = vld [vmem:[%s1235_s15 + $0x28] sm:$0xff]  ;;  %v380_v22 = vld [vmem:[%s1235_s15 + $0xa0] sm:$0xff]  ;;  %p943_p12 = scmp.ne.s32.totalorder %s1288_s16, %s942_s29  ;;  %s1035_s25 = smov [#allocation9]  }
  0x55   : > { %706 = vmatpush3.msra.mxu0 %v372_v7  ;;  %756 = vmatpush3.msra.mxu1 %v372_v7  ;;  %v364_v23 = vld [vmem:[%s1235_s15 + $0x20] sm:$0xff]  ;;  %v379_v24 = vld [vmem:[%s1235_s15 + $0x98] sm:$0xff]  ;;  %v378_v26 = vld [vmem:[%s1235_s15 + $0x90] sm:$0xff] }
  0x56   : > { %707 = vmatprep.subr.mxu0 %v387_v8  ;;  %741 = vmatprep.subr.mxu1 %v387_v8  ;;  %v363_v25 = vld [vmem:[%s1235_s15 + $0x18] sm:$0xff]  ;;  %v362_v27 = vld [vmem:[%s1235_s15 + $0x10] sm:$0xff]  ;;  %v377_v28 = vld [vmem:[%s1235_s15 + $0x88] sm:$0xff]  ;;  %p944_p2 = pnand %p943_p12, %p1356_p13 }
  0x57   : > { %708 = vmatpush3.msra.mxu0 %v371_v9  ;;  %757 = vmatpush3.msra.mxu1 %v371_v9  ;;  %v361_v29 = vld [vmem:[%s1235_s15 + $0x8] sm:$0xff]  ;;  %v376_v30 = vld [vmem:[%s1235_s15 + $0x80] sm:$0xff]  ;;  %v359_v33 = vld [vmem:[#allocation3 + $0x18] sm:$0xff] }
  0x58   : > { %709 = vmatprep.subr.mxu0 %v386_v10  ;;  %742 = vmatprep.subr.mxu1 %v386_v10  ;;  %v360_v31 = vld [vmem:[%s1235_s15] sm:$0xff]  ;;  %v357_v32 = vld [vmem:[#allocation3 + $0x8] sm:$0xff]  ;;  %v358_v35 = vld [vmem:[#allocation3 + $0x10] sm:$0xff]  ;;  %p945_p8 = pneg %p944_p2 }
  0x59   : > { %710 = vmatpush3.msra.mxu0 %v370_v11  ;;  %758 = vmatpush3.msra.mxu1 %v370_v11  ;;  %v356_v34 = vld [vmem:[#allocation3] sm:$0xff] }
  0x5a   : > { %711 = vmatprep.subr.mxu0 %v385_v12  ;;  %743 = vmatprep.subr.mxu1 %v385_v12  ;;  %v498_v1 = vld [vmem:[%s344_s8] sm:$0x1]  ;;  %s946_s8 = sshll.u32 %s1035_s25, 4  ;;  %s947_s8 = int_to_ptr.vmem [resolvable:$false] %s946_s8 }
  0x5b   : > { %712 = vmatpush3.msra.mxu0 %v369_v13  ;;  %759 = vmatpush3.msra.mxu1 %v369_v13  ;;  %v500_v5 = vld [vmem:[%s347_s26] sm:$0x1]  ;;  %s948_s10 = scalar_lea.vmem %s947_s8, 512  ;;  %p949_p1 = scmp.lt.s32.totalorder %s1288_s16, %s947_s8 }
  0x5c   : > { %713 = vmatprep.subr.mxu0 %v384_v14  ;;  %744 = vmatprep.subr.mxu1 %v384_v14  ;;  %p950_p3 = scmp.lt.s32.totalorder %s948_s10, %s942_s29 }
  0x5d   : > { %714 = vmatpush3.msra.mxu0 %v368_v15  ;;  %760 = vmatpush3.msra.mxu1 %v368_v15 }
  0x5e   : > { %715 = vmatprep.subr.mxu0 %v383_v16  ;;  %745 = vmatprep.subr.mxu1 %v383_v16  ;;  %p951_p5 = por %p950_p3, %p949_p1 }
  0x5f   : > { %716 = vmatpush3.msra.mxu0 %v367_v17  ;;  %761 = vmatpush3.msra.mxu1 %v367_v17 }
  0x60   : > { %717 = vmatprep.subr.mxu0 %v382_v18  ;;  %746 = vmatprep.subr.mxu1 %v382_v18  ;;  %p952_p6 = pnand %p951_p5, %p945_p8 }
  0x61   : > { %718 = vmatpush3.msra.mxu0 %v366_v19  ;;  %762 = vmatpush3.msra.mxu1 %v366_v19 }
  0x62   : > { %719 = vmatprep.subr.mxu0 %v381_v20  ;;  %747 = vmatprep.subr.mxu1 %v381_v20  ;;  %v527_v20 = vld [vmem:[%s302_s27] sm:$0xff] }
  0x63   : > { %720 = vmatpush3.msra.mxu0 %v365_v21  ;;  %763 = vmatpush3.msra.mxu1 %v365_v21 }
  0x64   : > { %721 = vmatprep.subr.mxu0 %v380_v22  ;;  %748 = vmatprep.subr.mxu1 %v380_v22  ;;  %v528_v22 = vld [vmem:[%s302_s27 + $0x8] sm:$0xff] }
  0x65   : > { %722 = vmatpush3.msra.mxu0 %v364_v23  ;;  %764 = vmatpush3.msra.mxu1 %v364_v23 }
  0x66   : > { %723 = vmatprep.subr.mxu0 %v379_v24  ;;  %749 = vmatprep.subr.mxu1 %v379_v24 }
  0x67   : > { %724 = vmatpush3.msra.mxu0 %v363_v25  ;;  %765 = vmatpush3.msra.mxu1 %v363_v25 }
  0x68   : > { %725 = vmatprep.subr.mxu0 %v378_v26  ;;  %750 = vmatprep.subr.mxu1 %v378_v26 }
  0x69   : > { %726 = vmatpush3.msra.mxu0 %v362_v27  ;;  %766 = vmatpush3.msra.mxu1 %v362_v27 }
  0x6a   : > { %727 = vmatprep.subr.mxu0 %v377_v28  ;;  %751 = vmatprep.subr.mxu1 %v377_v28 }
  0x6b   : > { %728 = vmatpush3.msra.mxu0 %v361_v29  ;;  %767 = vmatpush3.msra.mxu1 %v361_v29 }
  0x6c   : > { %729 = vmatprep.subr.mxu0 %v376_v30  ;;  %752 = vmatprep.subr.mxu1 %v376_v30 }
  0x6d   : > { %730 = vmatpush3.msra.mxu0 %v360_v31  ;;  %768 = vmatpush3.msra.mxu1 %v360_v31 }
  0x6e   : > { %456 = vmatprep.mubr.f32.mxu0 %v357_v32  ;;  %461 = vmatprep.mubr.f32.mxu1 %v359_v33 }
  0x6f   : > { %457 = vmatmul.mubr.f32.vlgmr.msra.gmra.mxu0 %v356_v34  ;;  %462 = vmatmul.mubr.f32.vlgmr.msra.gmra.mxu1 %v358_v35 }
 0x12f   : > { %v731_v36 = vpop.f32.mrf.mxu0  ;;  %v734_v37 = vpop.f32.mrf.mxu1 }
 0x131   : > { %v732_v38 = vpop.f32.mrf.mxu0  ;;  %v735_v39 = vpop.f32.mrf.mxu1 }
 0x132   : > { %v733_v40 = vadd.f32 %v732_v38, %v731_v36  ;;  %v736_v41 = vadd.f32 %v735_v39, %v734_v37 }
 0x134   : > { %v476_v42 = vadd.f32 %v736_v41, %v733_v40 }
 0x136   : > { %v477_v43 = vrot.slane %v476_v42, 4 }
 0x138   : > { %v478_v44 = vadd.f32 %v477_v43, %v476_v42 }
 0x13a   : > { %v479_v45 = vrot.slane %v478_v44, 2 }
 0x13c   : > { %v480_v46 = vadd.f32 %v479_v45, %v478_v44 }
 0x13e   : > { %v481_v47 = vrot.slane %v480_v46, 1 }
 0x140   : > { %v482_v48 = vadd.f32 %v481_v47, %v480_v46 }
 0x142   : > { %v483_v49 = vmul.f32 0.0625, %v482_v48 }
 0x144   : > { %v484_v50 = vsub.f32 %v733_v40, %v483_v49  ;;  %v485_v51 = vsub.f32 %v736_v41, %v483_v49 }
 0x146   : > { %v486_v52 = vmul.f32 %v484_v50, %v484_v50  ;;  %v487_v53 = vmul.f32 %v485_v51, %v485_v51 }
 0x148   : > { %v488_v54 = vadd.f32 %v487_v53, %v486_v52 }
 0x14a   : > { %v489_v55 = vrot.slane %v488_v54, 4 }
 0x14c   : > { %v490_v56 = vadd.f32 %v489_v55, %v488_v54 }
 0x14e   : > { %v491_v57 = vrot.slane %v490_v56, 2 }
 0x150   : > { %v492_v58 = vadd.f32 %v491_v57, %v490_v56 }
 0x152   : > { %v493_v59 = vrot.slane %v492_v58, 1 }
 0x154   : > { %v494_v60 = vadd.f32 %v493_v59, %v492_v58 }
 0x156   : > { %v495_v61 = vmul.f32 0.0625, %v494_v60 }
 0x158   : > { %v496_v62 = vadd.f32 1e-05, %v495_v61 }
 0x15a   : > { %854 = vrsqrt.f32 %v496_v62 }
 0x167   : > { %v855_v3 = vpop.eup %854 }
 0x168   : > { %v499_v4 = vmul.f32 %v855_v3, %v498_v1 }
 0x16a   : > { %v501_v6 = vmul.f32 %v499_v4, %v483_v49  ;;  %v507_v7 = vrot.slane %v499_v4, %v506_v2 }
 0x16c   : > { %v502_v8 = vsub.f32 %v500_v5, %v501_v6  ;;  %v509_v9 = vmul.f32 %v733_v40, %v507_v7  ;;  %v510_v10 = vmul.f32 %v736_v41, %v507_v7 }
 0x16e   : > { %v515_v11 = vrot.slane %v502_v8, %v506_v2 }
 0x170   : > { %v517_v12 = vadd.f32 %v515_v11, %v509_v9  ;;  %v518_v13 = vadd.f32 %v515_v11, %v510_v10 }
 0x172   : > { %v519_v14 = vmul.f32 0.5, %v517_v12  ;;  %v520_v15 = vmul.f32 0.5, %v518_v13 }
 0x174   : > { %856 = vtanh.f32 %v519_v14 }
 0x175   : > { %858 = vtanh.f32 %v520_v15 }
 0x181   : > { %v857_v16 = vpop.eup %856 }
 0x182   : > { %v859_v17 = vpop.eup %858  ;;  %v523_v18 = vadd.f32 1.0, %v857_v16 }
 0x183   : > { %v524_v19 = vadd.f32 1.0, %v859_v17 }
 0x184   : > { %v525_v21 = vmul.f32 0.5, %v523_v18 }
 0x185   : > { %v526_v23 = vmul.f32 0.5, %v524_v19 }
 0x186   : > { %v529_v24 = vmul.f32 %v527_v20, %v525_v21 }
 0x187   : > { %v530_v25 = vmul.f32 %v528_v22, %v526_v23 }
 0x188   : > { %531 = vst [vmem:[%s339_s28] sm:$0xff] %v529_v24 }
 0x189   : > { %532 = vst [vmem:[%s339_s28 + $0x8] sm:$0xff] %v530_v25 }
 0x18a   : > { %955 = shalt.err (!%p952_p6)
}
 0x18b   : > { %s956_s6 = scalar_lea.hbm %s1286_s17, 256  ;;  %s960_s14 = scalar_lea.hbm %s1341_s5, 512 }
 0x18c   : > { %p957_p9 = scmp.ne.s32.totalorder %s1286_s17, %s956_s6  ;;  %p961_p4 = scmp.lt.s32.totalorder %s1286_s17, %s1341_s5 }
 0x18d   : > { %p962_p7 = scmp.lt.s32.totalorder %s960_s14, %s956_s6 }
 0x18e   : > { %p958_p10 = pnand %p957_p9, %p1356_p13 }
 0x18f   : > { %p963_p11 = por %p962_p7, %p961_p4 }
 0x190   : > { %p959_p0 = pneg %p958_p10 }
 0x192   : > { %p964_p12 = pnand %p963_p11, %p959_p0 }
 0x194   : > { %967 = shalt.err (!%p964_p12)
}
 0x195   : > { %s1036_s9 = smov 128   ;;  %s1037_s15 = smov 256  }
 0x196   : > { %s1038_s29 = smov 8  }
 0x197   : > { %777 = dma.vmem_to_hbm [thread:$0]  (%p1356_p13), %s1288_s16, 256, %s1286_s17, %s534_s21, %s1036_s9, %s1037_s15, %s1038_s29  }
 0x198 PF: > { %s561_s25 = sand.u32 1, %s1006_s18   ;;  %p1357_p2 = scmp.ne.s32.totalorder %s1350_s12, 0 }
 0x199   : > { %p1358_p8 = scmp.ge.s32.totalorder %s1026_s23, 2  ;;  %s562_s8 = scalar_lea.sflag [#allocation5], %s561_s25 }
 0x19b   : > { %p791_p1 = pnand %p1358_p8, %p1357_p2 }
 0x19d   : > { %p792_p3 = pneg %p791_p1 }
 0x19f   : > { %1001 = dma.done.wait (%p792_p3), %s562_s8, 256  }
 0x1a0   : > { %1003 = vsyncadd (%p792_p3), %s562_s8, 4294967040  ;;  %s22_s23 = sadd.s32 1, %s1026_s23   ;;  %s1359_s18 = smov %s1010_s19 }
 0x1a1   : > { %p19_p5 = scmp.ge.s32.totalorder %s22_s23, 4   ;;  %s1360_s19 = smov %s1014_s20 }
 0x1a2   : > { %s1361_s20 = smov %s1120_s30  ;;  %s1362_s21 = smov %s1022_s22 }
 0x1a3   : > { %s1363_s22 = smov %s1365_s24  ;;  %21 = sbr.rel (!%p19_p5) target bundleno = 7 (0x7), region = 116 }
 0x1a8   :  { %567 = vsyncpa [#allocation4], 1 }
 0x1a9   :  { %569 = vsyncpa [#allocation4 + $0x1], 1 }
 0x1aa   :  { %570 = vsyncpa [#allocation7], 1 }
 0x1ab   :  { %572 = vsyncpa [#allocation7 + $0x1], 1 }
 0x1ac   :  { %573 = vsyncpa [#allocation5], 1 }
 0x1ad   :  { %575 = vsyncpa [#allocation5 + $0x1], 1 }

</bundles_post_ra>
